<compile_context>
chip_gen: v6e
topology: v6e:2x2x1
jax: 0.10.0
libtpu: 0.0.40
codegen_flags: <defaults>
</compile_context>

<pallas_src>
import functools

import jax
import jax.numpy as jnp
from jax import lax
from jax.experimental import pallas as pl
from jax.experimental.pallas import tpu as pltpu


def randomw_kernel(ci_ref, xi_ref, m_aug_ref, out_ref, sel_ref, *, n_node):
    C, S = out_ref.shape
    n_cell, n_lanes = m_aug_ref.shape

    # --- ci row gather: SMEM scalar index -> dynamic VMEM row load -> scratch (off the MXU) ---
    for c in range(C):  # tiny static unroll (C == 8)
        idx = jnp.minimum(jnp.maximum(ci_ref[c], 0), n_cell - 1)  # clamp: never read OOB VMEM
        sel_ref[pl.ds(c, 1), :] = m_aug_ref[pl.ds(idx, 1), :]

    # --- one-hot selector, built row-major (n_lanes, S) on the VPU ---
    # row xi[s] == 1 selects M[., xi[s]]; row n_node is all ones and picks up the folded bias.
    rows = lax.broadcasted_iota(jnp.int32, (n_lanes, S), 0)
    xi_b = jnp.broadcast_to(xi_ref[...], (n_lanes, S))
    onehot = jnp.where((rows == xi_b) | (rows == n_node), 1.0, 0.0).astype(jnp.float32)

    # --- the ONLY MXU op on the critical path: (C, 128) @ (128, S) -> (C, S) ---
    out_ref[...] = jnp.dot(sel_ref[...], onehot,
                           preferred_element_type=jnp.float32).astype(out_ref.dtype)


def fold_randomw_params(enc_table, emb_table, w, b):
    """Parameter-load-time fold (eval mode, frozen params): returns M_aug (n_cell, 128k)."""
    hi = jax.lax.Precision.HIGHEST
    m = jnp.dot(jnp.dot(emb_table, w, precision=hi), enc_table.T, precision=hi)   # (n_cell, n_node)
    vb = jnp.dot(emb_table, b, precision=hi)                                       # (n_cell,)
    m_aug = jnp.concatenate([m, vb[:, None]], axis=1)                              # (n_cell, n_node+1)
    pad = (-m_aug.shape[1]) % 128                                                  # lane-dense / aligned
    return jnp.pad(m_aug, ((0, 0), (0, pad)))


def randomw_forward(x_indices, c_indices, m_aug, n_node):
    """Single grid-less pallas_call: gather + folded projection/matmul, all fused."""
    S = x_indices.shape[0]
    C = c_indices.shape[0]
    n_cell, n_lanes = m_aug.shape

    ci = c_indices.astype(jnp.int32)                  # (C,)   -> SMEM scalars
    xi = x_indices.reshape(1, S).astype(jnp.int32)    # (1, S) -> VMEM index row

    flops = 2 * C * n_lanes * S
    bytes_accessed = 4 * (C + S + n_cell * n_lanes + C * S)

    kernel = functools.partial(randomw_kernel, n_node=n_node)
    return pl.pallas_call(
        kernel,
        out_shape=jax.ShapeDtypeStruct((C, S), jnp.float32),
        in_specs=[
            pl.BlockSpec(memory_space=pltpu.MemorySpace.SMEM),   # ci: scalar indices
            pl.BlockSpec(memory_space=pltpu.MemorySpace.VMEM),   # xi: index row
            pl.BlockSpec(memory_space=pltpu.MemorySpace.VMEM),   # folded table M_aug
        ],
        out_specs=pl.BlockSpec(memory_space=pltpu.MemorySpace.VMEM),
        scratch_shapes=[pltpu.VMEM((C, n_lanes), jnp.float32)],  # gathered rows
        cost_estimate=pl.CostEstimate(flops=flops, transcendentals=0,
                                      bytes_accessed=bytes_accessed),
    )(ci, xi, m_aug)


if __name__ == "__main__":
    # Module hyper-parameters (small, consistent with the PyTorch __init__).
    n_node, n_node_dim = 64, 32
    n_cell, n_dim = 16, 32
    S = 8   # len(x_indices)
    C = 8   # len(c_indices)

    key = jax.random.PRNGKey(0)
    k_enc, k_emb, k_w, k_b, k_xi, k_ci = jax.random.split(key, 6)

    # Deterministic parameter init (matches the PyTorch shapes, not a checkpoint).
    enc_table = jax.random.normal(k_enc, (n_node, n_node_dim), jnp.float32)   # nn.Embedding
    emb_table = jax.random.normal(k_emb, (n_cell, n_dim), jnp.float32)        # nn.Embedding
    lim = 1.0 / (n_node_dim ** 0.5)
    w = jax.random.uniform(k_w, (n_dim, n_node_dim), jnp.float32, -lim, lim)  # nn.Linear.weight
    b = jax.random.uniform(k_b, (n_dim,), jnp.float32, -lim, lim)             # nn.Linear.bias

    # Example index inputs.
    x_indices = jax.random.randint(k_xi, (S,), 0, n_node, jnp.int32)
    c_indices = jax.random.randint(k_ci, (C,), 0, n_cell, jnp.int32)

    # Offline fold (done once at parameter-load time, NOT per forward).
    m_aug = fold_randomw_params(enc_table, emb_table, w, b)

    out = randomw_forward(x_indices, c_indices, m_aug, n_node)
    out = jax.block_until_ready(out)
    assert out.shape == (C, S), out.shape

    # Pure-JAX reference of the original PyTorch forward (eval-mode dropout == identity).
    hi = jax.lax.Precision.HIGHEST
    encoded_ref = enc_table[x_indices]
    proj_ref = (jnp.dot(encoded_ref, w.T, precision=hi) + b).T     # (n_dim, S)
    out_ref_val = jnp.dot(emb_table[c_indices], proj_ref, precision=hi)  # (C, S)
    assert jnp.allclose(out, out_ref_val, atol=1e-4, rtol=1e-4), \
        float(jnp.max(jnp.abs(out - out_ref_val)))

    print("KERNEL_OK")
</pallas_src>

<mosaic_0001>
module attributes {stable_mosaic.version = 11 : i64} {
  func.func @randomw_kernel(%arg0: memref<8xi32, #tpu.memory_space<smem>>, %arg1: memref<1x8xi32, #tpu.memory_space<vmem>>, %arg2: memref<16x128xf32, #tpu.memory_space<vmem>>, %arg3: memref<8x8xf32, #tpu.memory_space<vmem>>, %arg4: memref<8x128xf32, #tpu.memory_space<vmem>>) attributes {dimension_semantics = [], scalar_prefetch = 0 : i64, scratch_operands = 1 : i64, tpu.core_type = #tpu.core_type<tc>} {
    %c0 = arith.constant 0 : index
    %0 = memref.load %arg0[%c0] : memref<8xi32, #tpu.memory_space<smem>>
    %c0_i32 = arith.constant 0 : i32
    %1 = arith.maxsi %0, %c0_i32 : i32
    %c15_i32 = arith.constant 15 : i32
    %2 = arith.minsi %1, %c15_i32 : i32
    %3 = arith.index_cast %2 : i32 to index
    %c0_0 = arith.constant 0 : index
    %4 = vector.load %arg2[%3, %c0_0] : memref<16x128xf32, #tpu.memory_space<vmem>>, vector<1x128xf32>
    %c0_1 = arith.constant 0 : index
    %c0_2 = arith.constant 0 : index
    %5 = vector.load %arg4[%c0_1, %c0_2] : memref<8x128xf32, #tpu.memory_space<vmem>>, vector<1x128xf32>
    tpu.vector_store %arg4[%c0_1, %c0_2], %4 {strides = array<i32>} : memref<8x128xf32, #tpu.memory_space<vmem>>, vector<1x128xf32>,
    %c1 = arith.constant 1 : index
    %6 = memref.load %arg0[%c1] : memref<8xi32, #tpu.memory_space<smem>>
    %c0_i32_3 = arith.constant 0 : i32
    %7 = arith.maxsi %6, %c0_i32_3 : i32
    %c15_i32_4 = arith.constant 15 : i32
    %8 = arith.minsi %7, %c15_i32_4 : i32
    %9 = arith.index_cast %8 : i32 to index
    %c0_5 = arith.constant 0 : index
    %10 = vector.load %arg2[%9, %c0_5] : memref<16x128xf32, #tpu.memory_space<vmem>>, vector<1x128xf32>
    %c1_6 = arith.constant 1 : index
    %c0_7 = arith.constant 0 : index
    %11 = vector.load %arg4[%c1_6, %c0_7] : memref<8x128xf32, #tpu.memory_space<vmem>>, vector<1x128xf32>
    tpu.vector_store %arg4[%c1_6, %c0_7], %10 {strides = array<i32>} : memref<8x128xf32, #tpu.memory_space<vmem>>, vector<1x128xf32>,
    %c2 = arith.constant 2 : index
    %12 = memref.load %arg0[%c2] : memref<8xi32, #tpu.memory_space<smem>>
    %c0_i32_8 = arith.constant 0 : i32
    %13 = arith.maxsi %12, %c0_i32_8 : i32
    %c15_i32_9 = arith.constant 15 : i32
    %14 = arith.minsi %13, %c15_i32_9 : i32
    %15 = arith.index_cast %14 : i32 to index
    %c0_10 = arith.constant 0 : index
    %16 = vector.load %arg2[%15, %c0_10] : memref<16x128xf32, #tpu.memory_space<vmem>>, vector<1x128xf32>
    %c2_11 = arith.constant 2 : index
    %c0_12 = arith.constant 0 : index
    %17 = vector.load %arg4[%c2_11, %c0_12] : memref<8x128xf32, #tpu.memory_space<vmem>>, vector<1x128xf32>
    tpu.vector_store %arg4[%c2_11, %c0_12], %16 {strides = array<i32>} : memref<8x128xf32, #tpu.memory_space<vmem>>, vector<1x128xf32>,
    %c3 = arith.constant 3 : index
    %18 = memref.load %arg0[%c3] : memref<8xi32, #tpu.memory_space<smem>>
    %c0_i32_13 = arith.constant 0 : i32
    %19 = arith.maxsi %18, %c0_i32_13 : i32
    %c15_i32_14 = arith.constant 15 : i32
    %20 = arith.minsi %19, %c15_i32_14 : i32
    %21 = arith.index_cast %20 : i32 to index
    %c0_15 = arith.constant 0 : index
    %22 = vector.load %arg2[%21, %c0_15] : memref<16x128xf32, #tpu.memory_space<vmem>>, vector<1x128xf32>
    %c3_16 = arith.constant 3 : index
    %c0_17 = arith.constant 0 : index
    %23 = vector.load %arg4[%c3_16, %c0_17] : memref<8x128xf32, #tpu.memory_space<vmem>>, vector<1x128xf32>
    tpu.vector_store %arg4[%c3_16, %c0_17], %22 {strides = array<i32>} : memref<8x128xf32, #tpu.memory_space<vmem>>, vector<1x128xf32>,
    %c4 = arith.constant 4 : index
    %24 = memref.load %arg0[%c4] : memref<8xi32, #tpu.memory_space<smem>>
    %c0_i32_18 = arith.constant 0 : i32
    %25 = arith.maxsi %24, %c0_i32_18 : i32
    %c15_i32_19 = arith.constant 15 : i32
    %26 = arith.minsi %25, %c15_i32_19 : i32
    %27 = arith.index_cast %26 : i32 to index
    %c0_20 = arith.constant 0 : index
    %28 = vector.load %arg2[%27, %c0_20] : memref<16x128xf32, #tpu.memory_space<vmem>>, vector<1x128xf32>
    %c4_21 = arith.constant 4 : index
    %c0_22 = arith.constant 0 : index
    %29 = vector.load %arg4[%c4_21, %c0_22] : memref<8x128xf32, #tpu.memory_space<vmem>>, vector<1x128xf32>
    tpu.vector_store %arg4[%c4_21, %c0_22], %28 {strides = array<i32>} : memref<8x128xf32, #tpu.memory_space<vmem>>, vector<1x128xf32>,
    %c5 = arith.constant 5 : index
    %30 = memref.load %arg0[%c5] : memref<8xi32, #tpu.memory_space<smem>>
    %c0_i32_23 = arith.constant 0 : i32
    %31 = arith.maxsi %30, %c0_i32_23 : i32
    %c15_i32_24 = arith.constant 15 : i32
    %32 = arith.minsi %31, %c15_i32_24 : i32
    %33 = arith.index_cast %32 : i32 to index
    %c0_25 = arith.constant 0 : index
    %34 = vector.load %arg2[%33, %c0_25] : memref<16x128xf32, #tpu.memory_space<vmem>>, vector<1x128xf32>
    %c5_26 = arith.constant 5 : index
    %c0_27 = arith.constant 0 : index
    %35 = vector.load %arg4[%c5_26, %c0_27] : memref<8x128xf32, #tpu.memory_space<vmem>>, vector<1x128xf32>
    tpu.vector_store %arg4[%c5_26, %c0_27], %34 {strides = array<i32>} : memref<8x128xf32, #tpu.memory_space<vmem>>, vector<1x128xf32>,
    %c6 = arith.constant 6 : index
    %36 = memref.load %arg0[%c6] : memref<8xi32, #tpu.memory_space<smem>>
    %c0_i32_28 = arith.constant 0 : i32
    %37 = arith.maxsi %36, %c0_i32_28 : i32
    %c15_i32_29 = arith.constant 15 : i32
    %38 = arith.minsi %37, %c15_i32_29 : i32
    %39 = arith.index_cast %38 : i32 to index
    %c0_30 = arith.constant 0 : index
    %40 = vector.load %arg2[%39, %c0_30] : memref<16x128xf32, #tpu.memory_space<vmem>>, vector<1x128xf32>
    %c6_31 = arith.constant 6 : index
    %c0_32 = arith.constant 0 : index
    %41 = vector.load %arg4[%c6_31, %c0_32] : memref<8x128xf32, #tpu.memory_space<vmem>>, vector<1x128xf32>
    tpu.vector_store %arg4[%c6_31, %c0_32], %40 {strides = array<i32>} : memref<8x128xf32, #tpu.memory_space<vmem>>, vector<1x128xf32>,
    %c7 = arith.constant 7 : index
    %42 = memref.load %arg0[%c7] : memref<8xi32, #tpu.memory_space<smem>>
    %c0_i32_33 = arith.constant 0 : i32
    %43 = arith.maxsi %42, %c0_i32_33 : i32
    %c15_i32_34 = arith.constant 15 : i32
    %44 = arith.minsi %43, %c15_i32_34 : i32
    %45 = arith.index_cast %44 : i32 to index
    %c0_35 = arith.constant 0 : index
    %46 = vector.load %arg2[%45, %c0_35] : memref<16x128xf32, #tpu.memory_space<vmem>>, vector<1x128xf32>
    %c7_36 = arith.constant 7 : index
    %c0_37 = arith.constant 0 : index
    %47 = vector.load %arg4[%c7_36, %c0_37] : memref<8x128xf32, #tpu.memory_space<vmem>>, vector<1x128xf32>
    tpu.vector_store %arg4[%c7_36, %c0_37], %46 {strides = array<i32>} : memref<8x128xf32, #tpu.memory_space<vmem>>, vector<1x128xf32>,
    %48 = tpu.iota {dimensions = array<i32: 0>} : vector<128x8xi32>
    %c0_38 = arith.constant 0 : index
    %c0_39 = arith.constant 0 : index
    %49 = vector.load %arg1[%c0_38, %c0_39] : memref<1x8xi32, #tpu.memory_space<vmem>>, vector<1x8xi32>
    %50 = vector.shape_cast %49 : vector<1x8xi32> to vector<1x8xi32>
    %51 = vector.broadcast %50 : vector<1x8xi32> to vector<128x8xi32>
    %52 = arith.cmpi eq, %48, %51 : vector<128x8xi32>
    %c64_i32 = arith.constant 64 : i32
    %53 = vector.broadcast %c64_i32 : i32 to vector<128x8xi32>
    %54 = arith.cmpi eq, %48, %53 : vector<128x8xi32>
    %55 = arith.ori %52, %54 : vector<128x8xi1>
    %cst = arith.constant 1.000000e+00 : f32
    %cst_40 = arith.constant 0.000000e+00 : f32
    %56 = vector.broadcast %cst : f32 to vector<128x8xf32>
    %57 = vector.broadcast %cst_40 : f32 to vector<128x8xf32>
    %58 = arith.select %55, %56, %57 : vector<128x8xi1>, vector<128x8xf32>
    %c0_41 = arith.constant 0 : index
    %c0_42 = arith.constant 0 : index
    %59 = vector.load %arg4[%c0_41, %c0_42] : memref<8x128xf32, #tpu.memory_space<vmem>>, vector<8x128xf32>
    %cst_43 = arith.constant dense<0.000000e+00> : vector<8x8xf32>
    %60 = tpu.matmul %59, %58, %cst_43 {dimension_numbers = #tpu.dot_dimension_numbers<[1], [0], [0], [1], [0, 0, 1, 1], [], []>} : vector<8x128xf32>, vector<128x8xf32>, vector<8x8xf32> -> vector<8x8xf32>
    %c0_44 = arith.constant 0 : index
    %c0_45 = arith.constant 0 : index
    %61 = vector.load %arg3[%c0_44, %c0_45] : memref<8x8xf32, #tpu.memory_space<vmem>>, vector<8x8xf32>
    tpu.vector_store %arg3[%c0_44, %c0_45], %60 {strides = array<i32>} : memref<8x8xf32, #tpu.memory_space<vmem>>, vector<8x8xf32>,
    return
  }
}

</mosaic_0001>

<bundles_post_ra>
// kernel: tpu_custom_call.1
= control target key start
LH: loop header
LB: loop body
LE: loop exit
PB: predicated region body
PF: predicated region fallthrough
CT: control target
= control target key end

     0   :  { %8 = vsyncpa [#allocation6], 0  ;;  %s637_s0 = inlined_call_operand.hbm [shape: s32[8], index: 0, kind: input, shape index: {}]   ;;  %s638_s1 = inlined_call_operand.vmem [shape: s32[1,8], index: 1, kind: input, shape index: {}]   ;;  %s639_s2 = inlined_call_operand.hbm [shape: f32[16,128], index: 2, kind: input, shape index: {}]   ;;  %s640_s3 = inlined_call_operand.hbm [shape: f32[8,8], index: 3, kind: output, shape index: {}]  }
   0x1   :  { %9 = vsyncpa [#allocation4], 0 }
   0x2   :  { %10 = vsyncpa [#allocation5], 0  ;;  %s481_s12 = smov [#allocation3]   ;;  %s482_s15 = smov [#allocation7]  }
   0x3   :  { %18 = dma.hbm_to_smem %s637_s0, 16, %s481_s12, [#allocation6]  }
   0x4   :  { %s26_s16 = sshll.u32 %s482_s15, 4  ;;  %s27_s16 = int_to_ptr.vmem [resolvable:$true] %s26_s16 }
   0x5   :  { %s443_s17 = scalar_lea.vmem %s27_s16, 256  ;;  %p448_p1 = scmp.lt.s32.totalorder %s27_s16, %s27_s16 }
   0x6   :  { %p444_p0 = scmp.ne.s32.totalorder %s27_s16, %s443_s17  ;;  %p449_p2 = scmp.lt.s32.totalorder %s443_s17, %s443_s17 }
   0x8   :  { %p450_p3 = por %p449_p2, %p448_p1 }
   0xa   :  { %p451_p4 = pnand %p450_p3, %p444_p0 }
   0xc   :  { %454 = shalt.err (!%p451_p4)
}
   0xd   :  { %s483_s18 = smov 128   ;;  %s484_s19 = smov 8  }
   0xe   :  { %32 = dma.hbm_to_vmem [thread:$0]  %s639_s2, 256, %s27_s16, [#allocation4], %s483_s18, %s483_s18, %s484_s19  }
   0xf   :  { %475 = dma.done.wait [#allocation6], 16  }
  0x10   :  { %476 = vsyncadd [#allocation6], 4294967280 }
  0x11   :  { %477 = dma.done.wait [#allocation4], 256  }
  0x12   :  { %478 = vsyncadd [#allocation4], 4294967040 }
  0x13   :  { %39 = sfence }
  0x14   :  { %v104_v0 = vlaneseq  ;;  %v485_v1 = vmov 0.0   ;;  %vm486_vm0 = vmmov 0   ;;  %s517_s0 = sld [smem:[#allocation3]]  ;;  %v526_v3 = vld [vmem:[%s638_s1] ss:$0 sm:$0xff]  ;;  %v487_v8 = vmov 1.0  }
  0x15   :  { %384 = vmatprep.subr.mxu0 %v485_v1  ;;  %416 = vmatprep.mubr.msk.f32.mxu0 %vm486_vm0, %v485_v1  ;;  %s521_s22 = sld [smem:[#allocation3 + $0x1]]  ;;  %s488_s15 = smov [#allocation8]  }
  0x16   :  { %v519_v2 = vshrl.u32 %v104_v0, 7  ;;  %s528_s24 = sld [smem:[#allocation3 + $0x2]]  ;;  %s269_s16 = sshll.u32 %s488_s15, 4  ;;  %s270_s16 = int_to_ptr.vmem [resolvable:$true] %s269_s16 }
  0x17   :  { %s533_s25 = sld [smem:[#allocation3 + $0x3]]  ;;  %s455_s17 = scalar_lea.vmem %s270_s16, 128 }
  0x18   :  { %v120_v4 = vadd.s32 120, %v519_v2  ;;  %v119_v5 = vadd.s32 112, %v519_v2  ;;  %v118_v6 = vadd.s32 104, %v519_v2  ;;  %s535_s26 = sld [smem:[#allocation3 + $0x4]]  ;;  %v117_v7 = vadd.s32 96, %v519_v2 }
  0x19   :  { %s540_s1 = sld [smem:[#allocation3 + $0x5]]  ;;  %v116_v9 = vadd.s32 88, %v519_v2  ;;  %v115_v10 = vadd.s32 80, %v519_v2  ;;  %v113_v11 = vadd.s32 64, %v519_v2  ;;  %v114_v12 = vadd.s32 72, %v519_v2 }
  0x1a   :  { %vm141_vm1 = vcmp.eq.s32.totalorder %v120_v4, %v526_v3  ;;  %vm140_vm2 = vcmp.eq.s32.totalorder %v119_v5, %v526_v3  ;;  %p41_p5 = scmp.gt.s32.totalorder %s517_s0, 0  ;;  %p287_p6 = scmp.lt.s32.totalorder %s517_s0, 15  ;;  %vm139_vm3 = vcmp.eq.s32.totalorder %v118_v6, %v526_v3  ;;  %vm138_vm4 = vcmp.eq.s32.totalorder %v117_v7, %v526_v3 }
  0x1b   :  { %385 = vmatpush3.msk.msra.mxu0 %vm141_vm1, %v487_v8  ;;  %p49_p7 = scmp.gt.s32.totalorder %s521_s22, 0  ;;  %p293_p8 = scmp.lt.s32.totalorder %s521_s22, 15  ;;  %vm137_vm5 = vcmp.eq.s32.totalorder %v116_v9, %v526_v3  ;;  %vm136_vm6 = vcmp.eq.s32.totalorder %v115_v10, %v526_v3  ;;  %vm134_vm7 = vcmp.eq.s32.totalorder %v113_v11, %v526_v3  ;;  %vm150_vm8 = vcmp.eq.s32.totalorder %v113_v11, 64 }
  0x1c   :  { %386 = vmatprep.subr.mxu0 %v485_v1  ;;  %s42_s27 = scalar_select %p41_p5, %s517_s0, 0  ;;  %vm135_vm9 = vcmp.eq.s32.totalorder %v114_v12, %v526_v3  ;;  %v112_v15 = vadd.s32 56, %v519_v2  ;;  %vm166_vm10 = vmor %vm134_vm7, %vm150_vm8  ;;  %v111_v16 = vadd.s32 48, %v519_v2  ;;  %v110_v17 = vadd.s32 40, %v519_v2 }
  0x1d   :  { %387 = vmatpush3.msk.msra.mxu0 %vm140_vm2, %v487_v8  ;;  %s642_s22 = smov (!%p49_p7, %s521_s22), 0  ;;  %p57_p9 = scmp.gt.s32.totalorder %s528_s24, 0  ;;  %v109_v19 = vadd.s32 32, %v519_v2  ;;  %v108_v21 = vadd.s32 24, %v519_v2  ;;  %v107_v22 = vadd.s32 16, %v519_v2  ;;  %v106_v24 = vadd.s32 8, %v519_v2 }
  0x1e   :  { %388 = vmatprep.subr.mxu0 %v485_v1  ;;  %s644_s27 = smov (!%p287_p6, %s42_s27), 15  ;;  %s646_s22 = smov (!%p293_p8, %s642_s22), 15  ;;  %vm133_vm11 = vcmp.eq.s32.totalorder %v112_v15, %v526_v3  ;;  %vm132_vm12 = vcmp.eq.s32.totalorder %v111_v16, %v526_v3  ;;  %vm131_vm13 = vcmp.eq.s32.totalorder %v110_v17, %v526_v3  ;;  %vm126_vm2 = vcmp.eq.s32.totalorder %v519_v2, %v526_v3 }
  0x1f   :  { %389 = vmatpush3.msk.msra.mxu0 %vm139_vm3, %v487_v8  ;;  %s45_s28 = scalar_lea.vmem [#allocation7], %s644_s27  ;;  %p299_p10 = scmp.lt.s32.totalorder %s528_s24, 15  ;;  %vm130_vm14 = vcmp.eq.s32.totalorder %v109_v19, %v526_v3  ;;  %vm129_vm15 = vcmp.eq.s32.totalorder %v108_v21, %v526_v3  ;;  %vm128_vm0 = vcmp.eq.s32.totalorder %v107_v22, %v526_v3  ;;  %vm127_vm1 = vcmp.eq.s32.totalorder %v106_v24, %v526_v3 }
  0x20   :  { %390 = vmatprep.subr.mxu0 %v485_v1  ;;  %v46_v13 = vld [vmem:[%s45_s28] sm:$0x1]  ;;  %s53_s29 = scalar_lea.vmem [#allocation7], %s646_s22  ;;  %p65_p11 = scmp.gt.s32.totalorder %s533_s25, 0  ;;  %vm261_vm3 = vcmask 64512  }
  0x21   :  { %391 = vmatpush3.msk.msra.mxu0 %vm138_vm4, %v487_v8  ;;  %47 = vst [vmem:[#allocation2] sm:$0x1] %v46_v13  ;;  %v54_v14 = vld [vmem:[%s53_s29] sm:$0x1]  ;;  %s58_s30 = scalar_select %p57_p9, %s528_s24, 0 }
  0x22   :  { %392 = vmatprep.subr.mxu0 %v485_v1  ;;  %55 = vst [vmem:[#allocation2 + $0x1] sm:$0x1] %v54_v14  ;;  %p305_p12 = scmp.lt.s32.totalorder %s533_s25, 15  ;;  %p73_p13 = scmp.gt.s32.totalorder %s535_s26, 0 }
  0x23   :  { %393 = vmatpush3.msk.msra.mxu0 %vm137_vm5, %v487_v8  ;;  %s648_s30 = smov (!%p299_p10, %s58_s30), 15  ;;  %p311_p0 = scmp.lt.s32.totalorder %s535_s26, 15 }
  0x24   :  { %394 = vmatprep.subr.mxu0 %v485_v1  ;;  %s66_s4 = scalar_select %p65_p11, %s533_s25, 0 }
  0x25   :  { %395 = vmatpush3.msk.msra.mxu0 %vm136_vm6, %v487_v8  ;;  %s61_s5 = scalar_lea.vmem [#allocation7], %s648_s30  ;;  %p81_p1 = scmp.gt.s32.totalorder %s540_s1, 0 }
  0x26   :  { %396 = vmatprep.subr.mxu0 %v485_v1  ;;  %v62_v18 = vld [vmem:[%s61_s5] sm:$0x1]  ;;  %s650_s4 = smov (!%p305_p12, %s66_s4), 15  ;;  %p317_p2 = scmp.lt.s32.totalorder %s540_s1, 15 }
  0x27   :  { %397 = vmatpush3.msk.msra.mxu0 %vm135_vm9, %v487_v8  ;;  %63 = vst [vmem:[#allocation2 + $0x2] sm:$0x1] %v62_v18  ;;  %s74_s6 = scalar_select %p73_p13, %s535_s26, 0 }
  0x28   :  { %398 = vmatprep.subr.mxu0 %v485_v1  ;;  %s69_s7 = scalar_lea.vmem [#allocation7], %s650_s4  ;;  %s610_s9 = sld [smem:[#allocation3 + $0x6]] }
  0x29   :  { %399 = vmatpush3.msk.msra.mxu0 %vm166_vm10, %v487_v8  ;;  %v70_v20 = vld [vmem:[%s69_s7] sm:$0x1]  ;;  %s652_s6 = smov (!%p311_p0, %s74_s6), 15  ;;  %s328_s11 = sld [smem:[#allocation3 + $0x7]] }
  0x2a   :  { %400 = vmatprep.subr.mxu0 %v485_v1  ;;  %71 = vst [vmem:[#allocation2 + $0x3] sm:$0x1] %v70_v20  ;;  %s82_s8 = scalar_select %p81_p1, %s540_s1, 0 }
  0x2b   :  { %401 = vmatpush3.msk.msra.mxu0 %vm133_vm11, %v487_v8  ;;  %s77_s10 = scalar_lea.vmem [#allocation7], %s652_s6  ;;  %p456_p7 = scmp.ne.s32.totalorder %s270_s16, %s455_s17 }
  0x2c   :  { %402 = vmatprep.subr.mxu0 %v485_v1  ;;  %v78_v23 = vld [vmem:[%s77_s10] sm:$0x1]  ;;  %s654_s8 = smov (!%p317_p2, %s82_s8), 15  ;;  %p460_p8 = scmp.lt.s32.totalorder %s270_s16, %s270_s16 }
  0x2d   :  { %403 = vmatpush3.msk.msra.mxu0 %vm132_vm12, %v487_v8  ;;  %79 = vst [vmem:[#allocation2 + $0x4] sm:$0x1] %v78_v23  ;;  %s85_s12 = scalar_lea.vmem [#allocation7], %s654_s8  ;;  %p461_p9 = scmp.lt.s32.totalorder %s455_s17, %s455_s17 }
  0x2e   :  { %404 = vmatprep.subr.mxu0 %v485_v1  ;;  %v86_v25 = vld [vmem:[%s85_s12] sm:$0x1]  ;;  %p89_p3 = scmp.gt.s32.totalorder %s610_s9, 0  ;;  %p323_p4 = scmp.lt.s32.totalorder %s610_s9, 15 }
  0x2f   :  { %405 = vmatpush3.msk.msra.mxu0 %vm131_vm13, %v487_v8  ;;  %87 = vst [vmem:[#allocation2 + $0x5] sm:$0x1] %v86_v25  ;;  %p97_p5 = scmp.gt.s32.totalorder %s328_s11, 0  ;;  %p329_p6 = scmp.lt.s32.totalorder %s328_s11, 15 }
  0x30   :  { %406 = vmatprep.subr.mxu0 %v485_v1  ;;  %s656_s9 = smov (!%p89_p3, %s610_s9), 0  ;;  %p462_p10 = por %p461_p9, %p460_p8 }
  0x31   :  { %407 = vmatpush3.msk.msra.mxu0 %vm130_vm14, %v487_v8  ;;  %s658_s9 = smov (!%p323_p4, %s656_s9), 15  ;;  %s660_s11 = smov (!%p97_p5, %s328_s11), 0 }
  0x32   :  { %408 = vmatprep.subr.mxu0 %v485_v1  ;;  %s93_s13 = scalar_lea.vmem [#allocation7], %s658_s9  ;;  %s662_s11 = smov (!%p329_p6, %s660_s11), 15 }
  0x33   :  { %409 = vmatpush3.msk.msra.mxu0 %vm129_vm15, %v487_v8  ;;  %v94_v26 = vld [vmem:[%s93_s13] sm:$0x1]  ;;  %s101_s14 = scalar_lea.vmem [#allocation7], %s662_s11  ;;  %p463_p11 = pnand %p462_p10, %p456_p7 }
  0x34   :  { %410 = vmatprep.subr.mxu0 %v485_v1  ;;  %95 = vst [vmem:[#allocation2 + $0x6] sm:$0x1] %v94_v26  ;;  %v102_v27 = vld [vmem:[%s101_s14] sm:$0x1] }
  0x35   :  { %411 = vmatpush3.msk.msra.mxu0 %vm128_vm0, %v487_v8  ;;  %103 = vst [vmem:[#allocation2 + $0x7] sm:$0x1] %v102_v27 }
  0x36   :  { %412 = vmatprep.subr.mxu0 %v485_v1 }
  0x37   :  { %413 = vmatpush3.msk.msra.mxu0 %vm127_vm1, %v487_v8 }
  0x38   :  { %414 = vmatprep.subr.mxu0 %v485_v1 }
  0x39   :  { %415 = vmatpush3.msk.msra.mxu0 %vm126_vm2, %v487_v8 }
  0x3c   :  { %v190_v28 = vld [vmem:[#allocation2] sm:$0xff] }
  0x3d   :  { %417 = vmatmul.mubr.f32.vlgmr.msra.gmra.mxu0 %v190_v28 }
  0xfd   :  { %v257_v29 = vpop.f32.mrf.mxu0 }
  0xfe   :  { %262 = vst.msk [vmem:[#allocation8] sm:$0xff] %vm261_vm3, %v257_v29 }
  0xff   :  { %v418_v30 = vpop.f32.mrf.mxu0 }
 0x100   :  { %466 = shalt.err (!%p463_p11)
}
 0x101   :  { %272 = dma.vmem_to_hbm [thread:$0]  %s270_s16, 128, %s640_s3, [#allocation5]  }
 0x102   :  { %479 = dma.done.wait [#allocation5], 128  }
 0x103   :  { %480 = vsyncadd [#allocation5], 4294967168 }
 0x104   :  { %276 = vsyncpa [#allocation4], 1 }
 0x105   :  { %277 = vsyncpa [#allocation5], 1 }
 0x106   :  { %278 = vsyncpa [#allocation6], 1 }

</bundles_post_ra>
